<compile_context>
chip_gen: v7x
topology: tpu7x:2x2x1
jax: 0.10.0
libtpu: 0.0.40
codegen_flags: <defaults>
</compile_context>

<pallas_src>
import jax
import jax.numpy as jnp
from jax.experimental import pallas as pl
from jax.experimental.pallas import tpu as pltpu

# ---- model dimensions (small, consistent with the module's forward) ----
R = 2              # n_regions
N = 32             # neurons per region
L = 4              # latent dim per region (dynamics_mod.L_K[r] = L)
P = 2              # iir_order
DR = L * (1 + P)   # packed per-region state dim (z_K + flattened H_KK)   = 12
D = R * DR         # total packed state dim                               = 24
RN = R * N         # neurons with regions stacked on the lane axis        = 64
B = 2              # n_trials
T = 8              # n_time_bins
S = 4              # n_samples
TB = T * B         # time-major flattened (t, b) row count                = 16


def _ssm_forward_kernel(y_ref, w_in_ref, A_ref, b0_ref, logsig_ref, w_out_ref,
                        eps_ref, z_ref, stats_ref):
    # block shapes (all equal to the full last-two dims -> no (8,128) issues):
    #   y_ref    : (TB, RN)  centered observations, row index = t*B + b
    #   w_in_ref : (RN, D)   block-diag C scatter into z_K lanes (H_KK lanes = 0)
    #   A_ref    : (D, D)    packed-state dynamics
    #   b0_ref   : (1, D)    initial_c_pdf mean
    #   logsig_ref: (1, D)   posterior log-scale
    #   w_out_ref: (D, RN)   block-diag C^T gather from z_K lanes
    #   eps_ref  : (S_grp, TB, D)  reparameterization noise for this sample group
    #   z_ref    : (S_grp, TB, D)
    #   stats_ref: (1, 2, TB)      row 0 = kl, row 1 = group-mean ell
    y = y_ref[...]                                    # (TB, RN), already y - d
    log_sigma = logsig_ref[...]                       # (1, D)
    sigma = jnp.exp(log_sigma)                        # (1, D)

    # --- 1) likelihood local update, all regions/trials/time-bins in one matmul
    k = jnp.dot(y, w_in_ref[...],
                preferred_element_type=jnp.float32)   # (TB, D)
    # hoist the per-step row extraction off the recurrence critical path
    k_rows = [k[t * B:(t + 1) * B, :] for t in range(T)]   # T x (B, D)

    # --- 2) nonlinear filter recurrence, batched over trials, kept in registers
    A = A_ref[...]                                    # (D, D)
    m_prev = b0_ref[...]                              # (1, D) -> broadcasts to (B, D)
    ms = []
    for t in range(T):
        m_t = jnp.tanh(jnp.dot(m_prev, A, preferred_element_type=jnp.float32)) \
              + k_rows[t]                             # (B, D)
        ms.append(m_t)
        m_prev = m_t
    m_all = jnp.concatenate(ms, axis=0)               # (TB, D), time-major rows

    # --- 3) posterior samples for this sample group -----------------------------
    eps = eps_ref[...]                                # (S_grp, TB, D)
    z = m_all[None] + sigma[None] * eps               # (S_grp, TB, D)
    z_ref[...] = z

    # --- 4) KL(q(z_t) || N(0, I)) per (t, b) row --------------------------------
    kl_const = 0.5 * jnp.sum(sigma * sigma - 1.0 - 2.0 * log_sigma,
                             axis=-1, keepdims=True)              # (1, 1)
    kl_col = kl_const + 0.5 * jnp.sum(m_all * m_all,
                                      axis=-1, keepdims=True)     # (TB, 1)

    # --- 5) expected log-lik per (t, b), mean over this group's samples ---------
    s_grp = eps.shape[0]
    yhat = jnp.dot(z.reshape(s_grp * TB, D), w_out_ref[...],
                   preferred_element_type=jnp.float32).reshape(s_grp, TB, RN)
    resid = y[None] - yhat                                        # (S_grp, TB, RN)
    ell_col = jnp.mean(-0.5 * jnp.sum(resid * resid, axis=-1, keepdims=True),
                       axis=0)                                    # (TB, 1)

    # --- 6) single lane-dense stats slab: one (2, TB) store per group -----------
    stats_ref[...] = jnp.concatenate(
        [kl_col.reshape(1, TB), ell_col.reshape(1, TB)], axis=0)[None]   # (1, 2, TB)


def _default_sample_groups():
    # v7x: 2 TensorCores per chip -> split samples across 2 parallel grid steps.
    # v5e/v6e (single TC): collapse to a single kernel invocation.
    try:
        kind = jax.devices()[0].device_kind.lower()
    except Exception:  # pragma: no cover
        kind = ""
    return 2 if "v7" in kind else 1


def low_rank_nl_ssm_forward(y_regions, params, eps, *, n_sample_groups=None):
    """y_regions: (R, B, T, N), eps: (S, B, T, D). Returns (loss, z_s, stats)."""
    C, d, A, b0, log_sigma = params
    if n_sample_groups is None:
        n_sample_groups = _default_sample_groups()
    assert S % n_sample_groups == 0
    s_grp = S // n_sample_groups

    # --- glue (plain XLA): layout + parameter folding ---------------------------
    # stack regions on the neuron/lane axis, fold d out, go time-major.
    y_all = jnp.transpose(y_regions, (1, 2, 0, 3)).reshape(B, T, RN)   # (B, T, RN)
    y_c = y_all - d.reshape(1, 1, RN)                                  # fold d out
    y_tm = jnp.transpose(y_c, (1, 0, 2)).reshape(TB, RN)               # (TB, RN)

    # block-diagonal padded emission weights (packed-state scatter / gather)
    W_in = jnp.zeros((RN, D), jnp.float32)
    W_out = jnp.zeros((D, RN), jnp.float32)
    for r in range(R):
        W_in = W_in.at[r * N:(r + 1) * N, r * DR:r * DR + L].set(C[r])
        W_out = W_out.at[r * DR:r * DR + L, r * N:(r + 1) * N].set(C[r].T)

    eps_tm = jnp.transpose(eps, (0, 2, 1, 3)).reshape(S, TB, D)        # (S, TB, D)

    def full(shape):
        nd = len(shape)
        return pl.BlockSpec(shape, lambda g, _nd=nd: (0,) * _nd)

    z_tm, stats = pl.pallas_call(
        _ssm_forward_kernel,
        out_shape=(
            jax.ShapeDtypeStruct((S, TB, D), jnp.float32),             # samples
            jax.ShapeDtypeStruct((n_sample_groups, 2, TB), jnp.float32),  # kl/ell
        ),
        grid=(n_sample_groups,),                                       # sample groups
        in_specs=[
            full((TB, RN)),                                            # y (centered)
            full((RN, D)),                                             # W_in
            full((D, D)),                                              # A
            full((1, D)),                                              # b0
            full((1, D)),                                              # log_sigma
            full((D, RN)),                                             # W_out
            pl.BlockSpec((s_grp, TB, D), lambda g: (g, 0, 0)),         # eps slab
        ],
        out_specs=(
            pl.BlockSpec((s_grp, TB, D), lambda g: (g, 0, 0)),         # contiguous z slab
            pl.BlockSpec((1, 2, TB), lambda g: (g, 0, 0)),             # stats slab
        ),
        compiler_params=pltpu.CompilerParams(dimension_semantics=("parallel",)),
    )(y_tm, W_in, A, b0.reshape(1, D), log_sigma.reshape(1, D), W_out, eps_tm)

    # --- glue: finish reductions / restore external layouts ---------------------
    z_full = jnp.transpose(z_tm.reshape(S, T, B, D), (0, 2, 1, 3))     # (S, B, T, D)

    kl = stats[0, 0].reshape(T, B).T                                   # (B, T)
    ell = jnp.mean(stats[:, 1, :], axis=0).reshape(T, B).T             # (B, T)
    ell = ell - 0.5 * RN * jnp.log(2.0 * jnp.pi)                       # Gaussian const
    # loss = (kl - ell).sum(dim=-1).mean()  -- cross-trial mean finished here
    loss = jnp.mean(jnp.sum(kl - ell, axis=-1))

    # glue: unpack_dense_multiregion_state (pure reshape/slice, stays in JAX)
    z_K, H_KK = [], []
    for r in range(R):
        zr = z_full[..., r * DR:(r + 1) * DR]
        z_K.append(zr[..., :L])
        H_KK.append(zr[..., L:].reshape(zr.shape[:-1] + (P, L)))

    z_s = {'z_K': z_K, 'H_KK': H_KK, 's_K': z_full}
    stats_d = {'kl': kl, 'ell': ell}
    return loss, z_s, stats_d


def make_params(key):
    kC, kd, kA, kb, ks = jax.random.split(key, 5)
    C = 0.1 * jax.random.normal(kC, (R, N, L), jnp.float32)        # per-region readout
    d = 0.1 * jax.random.normal(kd, (R, N), jnp.float32)           # per-region bias
    A = 0.1 * jax.random.normal(kA, (D, D), jnp.float32)           # packed-state dynamics
    b0 = 0.1 * jax.random.normal(kb, (1, D), jnp.float32)          # initial_c_pdf mean
    log_sigma = -1.0 + 0.01 * jax.random.normal(ks, (1, D), jnp.float32)
    return C, d, A, b0, log_sigma


if __name__ == "__main__":
    key = jax.random.PRNGKey(0)
    k_y, k_eps, k_par = jax.random.split(key, 3)

    # observations: R regions stacked, each (B, T, N)
    y = jax.random.normal(k_y, (R, B, T, N), jnp.float32)
    # reparameterization noise for n_samples = S posterior samples
    eps = jax.random.normal(k_eps, (S, B, T, D), jnp.float32)
    params = make_params(k_par)

    loss, z_s, stats = low_rank_nl_ssm_forward(y, params, eps)
    jax.block_until_ready((loss, z_s['s_K'], stats['kl']))

    assert z_s['s_K'].shape == (S, B, T, D)
    assert z_s['z_K'][0].shape == (S, B, T, L)
    assert z_s['H_KK'][0].shape == (S, B, T, P, L)
    assert stats['kl'].shape == (B, T)
    assert stats['ell'].shape == (B, T)
    assert loss.shape == ()
    assert bool(jnp.isfinite(loss))
    assert bool(jnp.all(jnp.isfinite(z_s['s_K'])))

    print("KERNEL_OK")
</pallas_src>

<mosaic_0001>
module attributes {stable_mosaic.version = 11 : i64} {
  func.func @_ssm_forward_kernel(%arg0: i32, %arg1: memref<16x64xf32, #tpu.memory_space<vmem>>, %arg2: memref<64x24xf32, #tpu.memory_space<vmem>>, %arg3: memref<24x24xf32, #tpu.memory_space<vmem>>, %arg4: memref<1x24xf32, #tpu.memory_space<vmem>>, %arg5: memref<1x24xf32, #tpu.memory_space<vmem>>, %arg6: memref<24x64xf32, #tpu.memory_space<vmem>>, %arg7: memref<4x16x24xf32, #tpu.memory_space<vmem>>, %arg8: memref<4x16x24xf32, #tpu.memory_space<vmem>>, %arg9: memref<1x2x16xf32, #tpu.memory_space<vmem>>) attributes {dimension_semantics = [#tpu.dimension_semantics<parallel>], iteration_bounds = array<i64: 1>, scalar_prefetch = 0 : i64, scratch_operands = 0 : i64, tpu.core_type = #tpu.core_type<tc>, window_params = [{pipeline_mode = #tpu.pipeline_mode<synchronous>, transform_indices = @transform_0, window_bounds = array<i64: 16, 64>}, {pipeline_mode = #tpu.pipeline_mode<synchronous>, transform_indices = @transform_1, window_bounds = array<i64: 64, 24>}, {pipeline_mode = #tpu.pipeline_mode<synchronous>, transform_indices = @transform_2, window_bounds = array<i64: 24, 24>}, {pipeline_mode = #tpu.pipeline_mode<synchronous>, transform_indices = @transform_3, window_bounds = array<i64: 1, 24>}, {pipeline_mode = #tpu.pipeline_mode<synchronous>, transform_indices = @transform_4, window_bounds = array<i64: 1, 24>}, {pipeline_mode = #tpu.pipeline_mode<synchronous>, transform_indices = @transform_5, window_bounds = array<i64: 24, 64>}, {transform_indices = @transform_6, window_bounds = array<i64: 4, 16, 24>}, {transform_indices = @transform_7, window_bounds = array<i64: 4, 16, 24>}, {transform_indices = @transform_8, window_bounds = array<i64: 1, 2, 16>}]} {
    %c0 = arith.constant 0 : index
    %c0_0 = arith.constant 0 : index
    %0 = vector.load %arg1[%c0, %c0_0] : memref<16x64xf32, #tpu.memory_space<vmem>>, vector<16x64xf32>
    %c0_1 = arith.constant 0 : index
    %c0_2 = arith.constant 0 : index
    %1 = vector.load %arg5[%c0_1, %c0_2] : memref<1x24xf32, #tpu.memory_space<vmem>>, vector<1x24xf32>
    %2 = math.exp %1 : vector<1x24xf32>
    %c0_3 = arith.constant 0 : index
    %c0_4 = arith.constant 0 : index
    %3 = vector.load %arg2[%c0_3, %c0_4] : memref<64x24xf32, #tpu.memory_space<vmem>>, vector<64x24xf32>
    %cst = arith.constant dense<0.000000e+00> : vector<16x24xf32>
    %4 = tpu.matmul %0, %3, %cst {dimension_numbers = #tpu.dot_dimension_numbers<[1], [0], [0], [1], [0, 0, 1, 1], [], []>} : vector<16x64xf32>, vector<64x24xf32>, vector<16x24xf32> -> vector<16x24xf32>
    %5 = vector.extract_strided_slice %4 {offsets = [0, 0], sizes = [2, 24], strides = [1, 1]} : vector<16x24xf32> to vector<2x24xf32>
    %6 = vector.extract_strided_slice %4 {offsets = [2, 0], sizes = [2, 24], strides = [1, 1]} : vector<16x24xf32> to vector<2x24xf32>
    %7 = vector.extract_strided_slice %4 {offsets = [4, 0], sizes = [2, 24], strides = [1, 1]} : vector<16x24xf32> to vector<2x24xf32>
    %8 = vector.extract_strided_slice %4 {offsets = [6, 0], sizes = [2, 24], strides = [1, 1]} : vector<16x24xf32> to vector<2x24xf32>
    %9 = vector.extract_strided_slice %4 {offsets = [8, 0], sizes = [2, 24], strides = [1, 1]} : vector<16x24xf32> to vector<2x24xf32>
    %10 = vector.extract_strided_slice %4 {offsets = [10, 0], sizes = [2, 24], strides = [1, 1]} : vector<16x24xf32> to vector<2x24xf32>
    %11 = vector.extract_strided_slice %4 {offsets = [12, 0], sizes = [2, 24], strides = [1, 1]} : vector<16x24xf32> to vector<2x24xf32>
    %12 = vector.extract_strided_slice %4 {offsets = [14, 0], sizes = [2, 24], strides = [1, 1]} : vector<16x24xf32> to vector<2x24xf32>
    %c0_5 = arith.constant 0 : index
    %c0_6 = arith.constant 0 : index
    %13 = vector.load %arg3[%c0_5, %c0_6] : memref<24x24xf32, #tpu.memory_space<vmem>>, vector<24x24xf32>
    %c0_7 = arith.constant 0 : index
    %c0_8 = arith.constant 0 : index
    %14 = vector.load %arg4[%c0_7, %c0_8] : memref<1x24xf32, #tpu.memory_space<vmem>>, vector<1x24xf32>
    %cst_9 = arith.constant dense<0.000000e+00> : vector<1x24xf32>
    %15 = tpu.matmul %14, %13, %cst_9 {dimension_numbers = #tpu.dot_dimension_numbers<[1], [0], [0], [1], [0, 0, 1, 1], [], []>} : vector<1x24xf32>, vector<24x24xf32>, vector<1x24xf32> -> vector<1x24xf32>
    %16 = math.tanh %15 : vector<1x24xf32>
    %17 = vector.broadcast %16 : vector<1x24xf32> to vector<2x24xf32>
    %18 = arith.addf %17, %5 : vector<2x24xf32>
    %cst_10 = arith.constant dense<0.000000e+00> : vector<2x24xf32>
    %19 = tpu.matmul %18, %13, %cst_10 {dimension_numbers = #tpu.dot_dimension_numbers<[1], [0], [0], [1], [0, 0, 1, 1], [], []>} : vector<2x24xf32>, vector<24x24xf32>, vector<2x24xf32> -> vector<2x24xf32>
    %20 = math.tanh %19 : vector<2x24xf32>
    %21 = arith.addf %20, %6 : vector<2x24xf32>
    %cst_11 = arith.constant dense<0.000000e+00> : vector<2x24xf32>
    %22 = tpu.matmul %21, %13, %cst_11 {dimension_numbers = #tpu.dot_dimension_numbers<[1], [0], [0], [1], [0, 0, 1, 1], [], []>} : vector<2x24xf32>, vector<24x24xf32>, vector<2x24xf32> -> vector<2x24xf32>
    %23 = math.tanh %22 : vector<2x24xf32>
    %24 = arith.addf %23, %7 : vector<2x24xf32>
    %cst_12 = arith.constant dense<0.000000e+00> : vector<2x24xf32>
    %25 = tpu.matmul %24, %13, %cst_12 {dimension_numbers = #tpu.dot_dimension_numbers<[1], [0], [0], [1], [0, 0, 1, 1], [], []>} : vector<2x24xf32>, vector<24x24xf32>, vector<2x24xf32> -> vector<2x24xf32>
    %26 = math.tanh %25 : vector<2x24xf32>
    %27 = arith.addf %26, %8 : vector<2x24xf32>
    %cst_13 = arith.constant dense<0.000000e+00> : vector<2x24xf32>
    %28 = tpu.matmul %27, %13, %cst_13 {dimension_numbers = #tpu.dot_dimension_numbers<[1], [0], [0], [1], [0, 0, 1, 1], [], []>} : vector<2x24xf32>, vector<24x24xf32>, vector<2x24xf32> -> vector<2x24xf32>
    %29 = math.tanh %28 : vector<2x24xf32>
    %30 = arith.addf %29, %9 : vector<2x24xf32>
    %cst_14 = arith.constant dense<0.000000e+00> : vector<2x24xf32>
    %31 = tpu.matmul %30, %13, %cst_14 {dimension_numbers = #tpu.dot_dimension_numbers<[1], [0], [0], [1], [0, 0, 1, 1], [], []>} : vector<2x24xf32>, vector<24x24xf32>, vector<2x24xf32> -> vector<2x24xf32>
    %32 = math.tanh %31 : vector<2x24xf32>
    %33 = arith.addf %32, %10 : vector<2x24xf32>
    %cst_15 = arith.constant dense<0.000000e+00> : vector<2x24xf32>
    %34 = tpu.matmul %33, %13, %cst_15 {dimension_numbers = #tpu.dot_dimension_numbers<[1], [0], [0], [1], [0, 0, 1, 1], [], []>} : vector<2x24xf32>, vector<24x24xf32>, vector<2x24xf32> -> vector<2x24xf32>
    %35 = math.tanh %34 : vector<2x24xf32>
    %36 = arith.addf %35, %11 : vector<2x24xf32>
    %cst_16 = arith.constant dense<0.000000e+00> : vector<2x24xf32>
    %37 = tpu.matmul %36, %13, %cst_16 {dimension_numbers = #tpu.dot_dimension_numbers<[1], [0], [0], [1], [0, 0, 1, 1], [], []>} : vector<2x24xf32>, vector<24x24xf32>, vector<2x24xf32> -> vector<2x24xf32>
    %38 = math.tanh %37 : vector<2x24xf32>
    %39 = arith.addf %38, %12 : vector<2x24xf32>
    %40 = tpu.concatenate %18, %21, %24, %27, %30, %33, %36, %39 in 0 : vector<2x24xf32>, vector<2x24xf32>, vector<2x24xf32>, vector<2x24xf32>, vector<2x24xf32>, vector<2x24xf32>, vector<2x24xf32>, vector<2x24xf32> -> vector<16x24xf32>
    %c0_17 = arith.constant 0 : index
    %c0_18 = arith.constant 0 : index
    %c0_19 = arith.constant 0 : index
    %41 = vector.load %arg7[%c0_17, %c0_18, %c0_19] : memref<4x16x24xf32, #tpu.memory_space<vmem>>, vector<4x16x24xf32>
    %42 = vector.shape_cast %40 : vector<16x24xf32> to vector<1x16x24xf32>
    %43 = vector.shape_cast %2 : vector<1x24xf32> to vector<1x1x24xf32>
    %44 = vector.broadcast %43 : vector<1x1x24xf32> to vector<4x16x24xf32>
    %45 = arith.mulf %44, %41 : vector<4x16x24xf32>
    %46 = vector.broadcast %42 : vector<1x16x24xf32> to vector<4x16x24xf32>
    %47 = arith.addf %46, %45 : vector<4x16x24xf32>
    %c0_20 = arith.constant 0 : index
    %c0_21 = arith.constant 0 : index
    %c0_22 = arith.constant 0 : index
    %48 = vector.load %arg8[%c0_20, %c0_21, %c0_22] : memref<4x16x24xf32, #tpu.memory_space<vmem>>, vector<4x16x24xf32>
    tpu.vector_store %arg8[%c0_20, %c0_21, %c0_22], %47 {strides = array<i32>} : memref<4x16x24xf32, #tpu.memory_space<vmem>>, vector<4x16x24xf32>,
    %49 = arith.mulf %2, %2 : vector<1x24xf32>
    %cst_23 = arith.constant 1.000000e+00 : f32
    %50 = vector.broadcast %cst_23 : f32 to vector<1x24xf32>
    %51 = arith.subf %49, %50 : vector<1x24xf32>
    %cst_24 = arith.constant 2.000000e+00 : f32
    %52 = vector.broadcast %cst_24 : f32 to vector<1x24xf32>
    %53 = arith.mulf %52, %1 : vector<1x24xf32>
    %54 = arith.subf %51, %53 : vector<1x24xf32>
    %cst_25 = arith.constant dense<0.000000e+00> : vector<1xf32>
    %55 = vector.multi_reduction <add>, %54, %cst_25 [1] : vector<1x24xf32> to vector<1xf32>
    %56 = vector.shape_cast %55 : vector<1xf32> to vector<1x1xf32>
    %cst_26 = arith.constant 5.000000e-01 : f32
    %57 = vector.broadcast %cst_26 : f32 to vector<1x1xf32>
    %58 = arith.mulf %57, %56 : vector<1x1xf32>
    %59 = arith.mulf %40, %40 : vector<16x24xf32>
    %cst_27 = arith.constant dense<0.000000e+00> : vector<16xf32>
    %60 = vector.multi_reduction <add>, %59, %cst_27 [1] : vector<16x24xf32> to vector<16xf32>
    %61 = vector.shape_cast %60 : vector<16xf32> to vector<16x1xf32>
    %cst_28 = arith.constant 5.000000e-01 : f32
    %62 = vector.broadcast %cst_28 : f32 to vector<16x1xf32>
    %63 = arith.mulf %62, %61 : vector<16x1xf32>
    %64 = vector.broadcast %58 : vector<1x1xf32> to vector<16x1xf32>
    %65 = arith.addf %64, %63 : vector<16x1xf32>
    %66 = vector.shape_cast %47 : vector<4x16x24xf32> to vector<64x24xf32>
    %c0_29 = arith.constant 0 : index
    %c0_30 = arith.constant 0 : index
    %67 = vector.load %arg6[%c0_29, %c0_30] : memref<24x64xf32, #tpu.memory_space<vmem>>, vector<24x64xf32>
    %cst_31 = arith.constant dense<0.000000e+00> : vector<64x64xf32>
    %68 = tpu.matmul %66, %67, %cst_31 {dimension_numbers = #tpu.dot_dimension_numbers<[1], [0], [0], [1], [0, 0, 1, 1], [], []>} : vector<64x24xf32>, vector<24x64xf32>, vector<64x64xf32> -> vector<64x64xf32>
    %69 = vector.shape_cast %68 : vector<64x64xf32> to vector<4x16x64xf32>
    %70 = vector.shape_cast %0 : vector<16x64xf32> to vector<1x16x64xf32>
    %71 = vector.broadcast %70 : vector<1x16x64xf32> to vector<4x16x64xf32>
    %72 = arith.subf %71, %69 : vector<4x16x64xf32>
    %73 = arith.mulf %72, %72 : vector<4x16x64xf32>
    %cst_32 = arith.constant dense<0.000000e+00> : vector<4x16xf32>
    %74 = vector.multi_reduction <add>, %73, %cst_32 [2] : vector<4x16x64xf32> to vector<4x16xf32>
    %75 = vector.shape_cast %74 : vector<4x16xf32> to vector<4x16x1xf32>
    %cst_33 = arith.constant -5.000000e-01 : f32
    %76 = vector.broadcast %cst_33 : f32 to vector<4x16x1xf32>
    %77 = arith.mulf %76, %75 : vector<4x16x1xf32>
    %cst_34 = arith.constant dense<0.000000e+00> : vector<16x1xf32>
    %78 = vector.multi_reduction <add>, %77, %cst_34 [0] : vector<4x16x1xf32> to vector<16x1xf32>
    %cst_35 = arith.constant 4.000000e+00 : f32
    %79 = vector.broadcast %cst_35 : f32 to vector<16x1xf32>
    %80 = arith.divf %78, %79 : vector<16x1xf32>
    %81 = vector.shape_cast %65 : vector<16x1xf32> to vector<1x16xf32>
    %82 = vector.shape_cast %80 : vector<16x1xf32> to vector<1x16xf32>
    %83 = tpu.concatenate %81, %82 in 0 : vector<1x16xf32>, vector<1x16xf32> -> vector<2x16xf32>
    %84 = vector.shape_cast %83 : vector<2x16xf32> to vector<1x2x16xf32>
    %c0_36 = arith.constant 0 : index
    %c0_37 = arith.constant 0 : index
    %c0_38 = arith.constant 0 : index
    %85 = vector.load %arg9[%c0_36, %c0_37, %c0_38] : memref<1x2x16xf32, #tpu.memory_space<vmem>>, vector<1x2x16xf32>
    tpu.vector_store %arg9[%c0_36, %c0_37, %c0_38], %84 {strides = array<i32>} : memref<1x2x16xf32, #tpu.memory_space<vmem>>, vector<1x2x16xf32>,
    return
  }
  func.func @transform_0(%arg0: i32) -> (i32, i32) {
    %c0_i32 = arith.constant 0 : i32
    %c0_i32_0 = arith.constant 0 : i32
    %c0_i32_1 = arith.constant 0 : i32
    return %c0_i32, %c0_i32_0 : i32, i32
  }
  func.func @transform_1(%arg0: i32) -> (i32, i32) {
    %c0_i32 = arith.constant 0 : i32
    %c0_i32_0 = arith.constant 0 : i32
    %c0_i32_1 = arith.constant 0 : i32
    return %c0_i32, %c0_i32_0 : i32, i32
  }
  func.func @transform_2(%arg0: i32) -> (i32, i32) {
    %c0_i32 = arith.constant 0 : i32
    %c0_i32_0 = arith.constant 0 : i32
    %c0_i32_1 = arith.constant 0 : i32
    return %c0_i32, %c0_i32_0 : i32, i32
  }
  func.func @transform_3(%arg0: i32) -> (i32, i32) {
    %c0_i32 = arith.constant 0 : i32
    %c0_i32_0 = arith.constant 0 : i32
    %c0_i32_1 = arith.constant 0 : i32
    return %c0_i32, %c0_i32_0 : i32, i32
  }
  func.func @transform_4(%arg0: i32) -> (i32, i32) {
    %c0_i32 = arith.constant 0 : i32
    %c0_i32_0 = arith.constant 0 : i32
    %c0_i32_1 = arith.constant 0 : i32
    return %c0_i32, %c0_i32_0 : i32, i32
  }
  func.func @transform_5(%arg0: i32) -> (i32, i32) {
    %c0_i32 = arith.constant 0 : i32
    %c0_i32_0 = arith.constant 0 : i32
    %c0_i32_1 = arith.constant 0 : i32
    return %c0_i32, %c0_i32_0 : i32, i32
  }
  func.func @transform_6(%arg0: i32) -> (i32, i32, i32) {
    %c0_i32 = arith.constant 0 : i32
    %c0_i32_0 = arith.constant 0 : i32
    %c0_i32_1 = arith.constant 0 : i32
    return %arg0, %c0_i32, %c0_i32_0 : i32, i32, i32
  }
  func.func @transform_7(%arg0: i32) -> (i32, i32, i32) {
    %c0_i32 = arith.constant 0 : i32
    %c0_i32_0 = arith.constant 0 : i32
    %c0_i32_1 = arith.constant 0 : i32
    return %arg0, %c0_i32, %c0_i32_0 : i32, i32, i32
  }
  func.func @transform_8(%arg0: i32) -> (i32, i32, i32) {
    %c0_i32 = arith.constant 0 : i32
    %c0_i32_0 = arith.constant 0 : i32
    %c0_i32_1 = arith.constant 0 : i32
    return %arg0, %c0_i32, %c0_i32_0 : i32, i32, i32
  }
}

</mosaic_0001>

<bundles_post_ra>
// kernel: tpu_custom_call.1
= control target key start
LH: loop header
LB: loop body
LE: loop exit
PB: predicated region body
PF: predicated region fallthrough
CT: control target
= control target key end

     0   :  { %14 = vsyncpa [#allocation3], 0  ;;  %s1751_s0 = inlined_call_operand.vmem [shape: f32[16,64], index: 0, kind: input, shape index: {}]   ;;  %s1752_s1 = inlined_call_operand.vmem [shape: f32[64,24], index: 1, kind: input, shape index: {}]   ;;  %s1753_s2 = inlined_call_operand.vmem [shape: f32[24,24], index: 2, kind: input, shape index: {}]   ;;  %s1754_s3 = inlined_call_operand.vmem [shape: f32[1,24], index: 3, kind: input, shape index: {}]   ;;  %s1755_s4 = inlined_call_operand.vmem [shape: f32[1,24], index: 4, kind: input, shape index: {}]   ;;  %s1756_s5 = inlined_call_operand.hbm [shape: f32[24,64], index: 5, kind: input, shape index: {}]   ;;  %s1757_s6 = inlined_call_operand.vmem [shape: f32[4,16,24], index: 6, kind: input, shape index: {}]   ;;  %s1758_s7 = inlined_call_operand.hbm [shape: f32[4,16,24], index: 7, kind: output, shape index: {0}]   ;;  %s1759_s8 = inlined_call_operand.hbm [shape: f32[1,2,16], index: 8, kind: output, shape index: {1}]  }
   0x1   :  { %15 = vsyncpa [#allocation4], 0 }
   0x2   :  { %16 = vsyncpa [#allocation7], 0  ;;  %s1422_s27 = smov [#allocation2]   ;;  %s1350_s9 = scalar_lea.hbm %s1756_s5, 384 }
   0x3   :  { %s32_s28 = sshll.u32 %s1422_s27, 4  ;;  %p1351_p0 = scmp.ne.s32.totalorder %s1756_s5, %s1350_s9  ;;  %s33_s28 = int_to_ptr.vmem [resolvable:$true] %s32_s28 }
   0x4   :  { %p1354_p1 = scmp.lt.u32.totalorder %s1350_s9, %s1756_s5 }
   0x6   :  { %p1356_p2 = pnand %p1354_p1, %p1351_p0 }
   0x8   :  { %1359 = shalt.err (!%p1356_p2)
}
   0x9   :  { %s1360_s14 = scalar_lea.vmem %s33_s28, 384  ;;  %p1365_p4 = scmp.lt.s32.totalorder %s33_s28, %s33_s28 }
   0xa   :  { %p1361_p3 = scmp.ne.s32.totalorder %s33_s28, %s1360_s14  ;;  %p1366_p5 = scmp.lt.s32.totalorder %s1360_s14, %s1360_s14 }
   0xc   :  { %p1367_p6 = por %p1366_p5, %p1365_p4 }
   0xe   :  { %p1368_p7 = pnand %p1367_p6, %p1361_p3 }
  0x10   :  { %1371 = shalt.err (!%p1368_p7)
}
  0x11   :  { %s1423_s15 = smov 128   ;;  %s1424_s16 = smov 8  }
  0x12   :  { %38 = dma.hbm_to_vmem [thread:$0]  %s1756_s5, 384, %s33_s28, [#allocation3], %s1423_s15, %s1423_s15, %s1424_s16  }
  0x13   :  { %1416 = dma.done.wait [#allocation3], 384  }
  0x14   :  { %1417 = vsyncadd [#allocation3], 4294966912  ;;  %v1425_v0 = vmov 0.0|0.0   ;;  %vm1426_vm0 = vmmov 0   ;;  %v1427_v1 = vmov 0.0   ;;  %v49_v2 = vld [vmem:[%s1752_s1] sm:$0xff]  ;;  %v218_v24 = vlaneseq }
  0x15   :  { %1299 = vmatprep.subr.bf16.mxu1 %v1425_v0  ;;  %1205 = vmatprep.mubr.msk.f32.mxu1 %vm1426_vm0, %v1427_v1  ;;  %v50_v3 = vld [vmem:[%s1752_s1 + $0x8] sm:$0xff]  ;;  %v51_v4 = vld [vmem:[%s1752_s1 + $0x10] sm:$0xff]  ;;  %vm57_vm1 = vcmask 523264   ;;  %v52_v6 = vld [vmem:[%s1752_s1 + $0x18] sm:$0xff]  ;;  %vm143_vm2 = vcmask 195584   ;;  %vm775_vm3 = vcmask 1041408  }
  0x16   :  { %v1280_v5 = vpack.c.bf16 %v50_v3, %v49_v2  ;;  %v1284_v7 = vpack.c.bf16 %v52_v6, %v51_v4  ;;  %v53_v8 = vld [vmem:[%s1752_s1 + $0x20] sm:$0xff]  ;;  %v54_v9 = vld [vmem:[%s1752_s1 + $0x28] sm:$0xff]  ;;  %v55_v15 = vld [vmem:[%s1752_s1 + $0x30] sm:$0xff]  ;;  %v1568_v26 = vshrl.u32 %v218_v24, 7  ;;  %vm777_vm4 = vcmask 1043456  }
  0x17   :  { %v1514_v10 = vld [vmem:[%s1751_s0] sm:$0xff]  ;;  %v140_v12 = vld [vmem:[%s1753_s2 + $0x8] sm:$0xff]  ;;  %v1288_v14 = vpack.c.bf16 %v54_v9, %v53_v8  ;;  %v56_v16 = vld [vmem:[%s1752_s1 + $0x38] sm:$0xff]  ;;  %vm779_vm5 = vcmask 1045504   ;;  %vm826_vm6 = vcmask 188416  }
  0x18   :  { %1281 = vmatprep.subr.bf16.mxu0 %v1280_v5  ;;  %1187 = vmatprep.mubr.msk.f32.mxu0 %vm57_vm1, %v1514_v10  ;;  %v139_v11 = vld [vmem:[%s1753_s2] sm:$0xff]  ;;  %v1292_v17 = vpack.c.bf16 %v56_v16, %v55_v15  ;;  %v1537_v18 = vld [vmem:[%s1753_s2 + $0x10] sm:$0xff]  ;;  %v1544_v19 = vld [vmem:[%s1751_s0 + $0x8] sm:$0xff]  ;;  %v1571_v27 = vsub.s32 0, %v1568_v26 }
  0x19   :  { %1283 = vmatpush3.bf16.msra.mxu0 %v1280_v5  ;;  %v1524_v13 = vpack.c.bf16 %v140_v12, %v139_v11  ;;  %v142_v20 = vld [vmem:[%s1754_s3] sm:$0x1]  ;;  %v786_v53 = vld [vmem:[%s1757_s6 + $0x10] sm:$0xff] }
  0x1a   :  { %1285 = vmatprep.subr.bf16.mxu0 %v1284_v7  ;;  %v1600_v45 = vld [vmem:[%s1755_s4] sm:$0x1]  ;;  %v790_v55 = vld [vmem:[%s1757_s6 + $0x30] sm:$0xff] }
  0x1b   :  { %1301 = vmatpush3.bf16.msra.mxu1 %v1524_v13  ;;  %v47_v46 = vmul.f32 1.442695, %v1600_v45  ;;  %v784_v51 = vld [vmem:[%s1757_s6] sm:$0xff] }
  0x1c   :  { %1203 = vmatprep.subr.mxu1 %v1427_v1  ;;  %v788_v54 = vld [vmem:[%s1757_s6 + $0x20] sm:$0xff] }
  0x1d   :  { %1287 = vmatpush3.bf16.msra.mxu0 %v1284_v7 }
  0x1e   :  { %1289 = vmatprep.subr.bf16.mxu0 %v1288_v14 }
  0x1f   :  { %1204 = vmatpush3.msra.mxu1 %v1537_v18 }
  0x20   :  { %1302 = vmatprep.subr.bf16.mxu1 %v1425_v0 }
  0x21   :  { %1291 = vmatpush3.bf16.msra.mxu0 %v1288_v14 }
  0x22   :  { %1293 = vmatprep.subr.bf16.mxu0 %v1292_v17 }
  0x25   :  { %1295 = vmatpush3.bf16.msra.mxu0 %v1292_v17 }
  0x26   :  { %1296 = vmatprep.subr.bf16.mxu0 %v1425_v0 }
  0x28   :  { %1188 = vmatmul.mubr.msk.f32.vlgmr.msra.gmra.mrb[0].mxu0 %vm57_vm1, %v1544_v19 }
  0x29   :  { %1298 = vmatpush3.bf16.msra.mxu0 %v1524_v13  ;;  %1196 = vmatprep.mubr.msk.f32.mxu0 %vm1426_vm0, %v1427_v1 }
  0x2a   :  { %1194 = vmatprep.subr.mxu0 %v1427_v1 }
  0x2d   :  { %1195 = vmatpush3.msra.mxu0 %v1537_v18 }
  0x2e   :  { %1197 = vmatmul.mubr.msk.f32.vlgmr.msra.gmra.mrb[2].mxu0 %vm143_vm2, %v142_v20  ;;  %1305 = vmatprep.subr.bf16.mxu0 %v1425_v0 }
  0x2f   :  { %1307 = vmatpush3.bf16.msra.mxu0 %v1524_v13  ;;  %1223 = vmatprep.mubr.msk.f32.mxu0 %vm1426_vm0, %v1427_v1 }
  0x30   :  { %1221 = vmatprep.subr.mxu0 %v1427_v1 }
  0x33   :  { %1222 = vmatpush3.msra.mxu0 %v1537_v18 }
  0x34   :  { %1311 = vmatprep.subr.bf16.mxu0 %v1425_v0 }
  0xfb   :  { %v1565_v21 = vpop.f32.mrb[0].mxu0 }
  0xfc   :  { %v130_v22 = vpop.f32.mrb[1].mxu0  ;;  %v605_v12 = vrot.slane %v1565_v21, 2  ;;  %v682_v17 = vrot.slane %v1565_v21, 4 }
  0xfd   :  { %v298_v33 = vrot.slane %v130_v22, 2  ;;  %v375_v38 = vrot.slane %v130_v22, 4  ;;  %v452_v52 = vrot.slane %v130_v22, 6 }
 0x101   :  { %v213_v23 = vpop.f32.mrb[2].mxu0 }
 0x102   :  { %1332 = vtanh.f32 %v213_v23  ;;  %v1198_v25 = vpop.f32.mrb[3].mxu0 }
 0x10c   :  { %v1333_v28 = vpop.eup %1332 }
 0x10d   :  { %v221_v29 = vrot.slane %v1333_v28, %v1571_v27  ;;  %v847_v28 = vld [vmem:[#allocation2] sm:$0xff] }
 0x10f   :  { %v222_v30 = vadd.f32 %v221_v29, %v130_v22  ;;  %v848_v29 = vld [vmem:[#allocation2 + $0x8] sm:$0xff] }
 0x111   :  { %1206 = vmatmul.mubr.msk.f32.vlgmr.msra.gmra.mrb[0].mxu1 %vm143_vm2, %v222_v30 }
 0x112   :  { %1304 = vmatpush3.bf16.msra.mxu1 %v1524_v13  ;;  %1214 = vmatprep.mubr.msk.f32.mxu1 %vm1426_vm0, %v1427_v1 }
 0x113   :  { %1212 = vmatprep.subr.mxu1 %v1427_v1 }
 0x116   :  { %1213 = vmatpush3.msra.mxu1 %v1537_v18 }
 0x117   :  { %1308 = vmatprep.subr.bf16.mxu1 %v1425_v0 }
 0x1e4   :  { %v292_v31 = vpop.f32.mrb[0].mxu1 }
 0x1e5   :  { %1334 = vtanh.f32 %v292_v31  ;;  %v1207_v32 = vpop.f32.mrb[1].mxu1  ;;  %v849_v31 = vld [vmem:[#allocation2 + $0x10] sm:$0xff] }
 0x1ef   :  { %v1335_v34 = vpop.eup %1334 }
 0x1f0   :  { %v300_v35 = vadd.f32 %v1335_v34, %v298_v33  ;;  %v785_v34 = vld [vmem:[%s1757_s6 + $0x8] sm:$0xff] }
 0x1f2   :  { %1215 = vmatmul.mubr.msk.f32.vlgmr.msra.gmra.mrb[2].mxu1 %vm143_vm2, %v300_v35  ;;  %v762_v40 = vrot.slane %v300_v35, 6  ;;  %v759_v35 = vrot.slane %v1565_v21, 6 }
 0x1f3   :  { %1310 = vmatpush3.bf16.msra.mxu1 %v1524_v13  ;;  %1232 = vmatprep.mubr.msk.f32.mxu1 %vm1426_vm0, %v1427_v1 }
 0x1f4   :  { %1230 = vmatprep.subr.mxu1 %v1427_v1  ;;  %v776_v43 = vsel %vm775_vm3, %v222_v30, %v762_v40  ;;  %v1320_v30 = vpack.c.bf16 %v848_v29, %v847_v28 }
 0x1f7   :  { %1231 = vmatpush3.msra.mxu1 %v1537_v18 }
 0x1f8   :  { %1314 = vmatprep.subr.bf16.mxu1 %v1425_v0 }
 0x2c5   :  { %v370_v36 = vpop.f32.mrb[2].mxu1 }
 0x2c6   :  { %1336 = vtanh.f32 %v370_v36  ;;  %v1216_v37 = vpop.f32.mrb[3].mxu1  ;;  %v787_v36 = vld [vmem:[%s1757_s6 + $0x18] sm:$0xff] }
 0x2c7   :  { %1338 = vpow2.f32 %v47_v46  ;;  %v789_v37 = vld [vmem:[%s1757_s6 + $0x28] sm:$0xff] }
 0x2d0   :  { %v1337_v39 = vpop.eup %1336 }
 0x2d1   :  { %v377_v41 = vadd.f32 %v1337_v39, %v375_v38  ;;  %v1603_v49 = vpop.eup %1338  ;;  %v791_v38 = vld [vmem:[%s1757_s6 + $0x38] sm:$0xff]  ;;  %s1428_s6 = smov [#allocation5]  }
 0x2d2   :  { %v1607_v50 = vrot.slane %v1603_v49, %v1571_v27  ;;  %s1073_s18 = sshll.u32 %s1428_s6, 4  ;;  %s1074_s18 = int_to_ptr.vmem [resolvable:$true] %s1073_s18 }
 0x2d3   :  { %v764_v42 = vrot.slane %v377_v41, 4  ;;  %1224 = vmatmul.mubr.msk.f32.vlgmr.msra.gmra.mrb[4].mxu0 %vm143_vm2, %v377_v41  ;;  %s1372_s19 = scalar_lea.vmem %s1074_s18, 1024  ;;  %p1377_p9 = scmp.lt.s32.totalorder %s1074_s18, %s1074_s18 }
 0x2d4   :  { %1313 = vmatpush3.bf16.msra.mxu0 %v1524_v13  ;;  %1241 = vmatprep.mubr.msk.f32.mxu0 %vm1426_vm0, %v1427_v1  ;;  %v798_v58 = vmul.f32 %v1607_v50, %v784_v51  ;;  %v800_v59 = vmul.f32 %v1607_v50, %v786_v53  ;;  %v802_v60 = vmul.f32 %v1607_v50, %v788_v54  ;;  %v824_v54 = vmul.f32 2.0, %v1600_v45  ;;  %p1373_p8 = scmp.ne.s32.totalorder %s1074_s18, %s1372_s19  ;;  %p1378_p10 = scmp.lt.s32.totalorder %s1372_s19, %s1372_s19 }
 0x2d5   :  { %1239 = vmatprep.subr.mxu0 %v1427_v1  ;;  %v778_v44 = vsel %vm777_vm4, %v776_v43, %v764_v42  ;;  %v804_v61 = vmul.f32 %v1607_v50, %v790_v55  ;;  %v799_v41 = vmul.f32 %v1607_v50, %v785_v34  ;;  %v801_v42 = vmul.f32 %v1607_v50, %v787_v36 }
 0x2d6   :  { %v805_v43 = vmul.f32 %v1607_v50, %v791_v38  ;;  %p1379_p11 = por %p1378_p10, %p1377_p9 }
 0x2d8   :  { %1240 = vmatpush3.msra.mxu0 %v1537_v18  ;;  %p1380_p12 = pnand %p1379_p11, %p1373_p8 }
 0x2d9   :  { %1317 = vmatprep.subr.bf16.mxu0 %v1425_v0 }
 0x3a6   :  { %v447_v47 = vpop.f32.mrb[4].mxu0 }
 0x3a7   :  { %1340 = vtanh.f32 %v447_v47  ;;  %v1225_v48 = vpop.f32.mrb[5].mxu0 }
 0x3b1   :  { %v1341_v56 = vpop.eup %1340 }
 0x3b2   :  { %v454_v57 = vadd.f32 %v1341_v56, %v452_v52 }
 0x3b4   :  { %v766_v62 = vrot.slane %v454_v57, 2  ;;  %1233 = vmatmul.mubr.msk.f32.vlgmr.msra.gmra.mrb[4].mxu1 %vm143_vm2, %v454_v57 }
 0x3b5   :  { %1316 = vmatpush3.bf16.msra.mxu1 %v1524_v13  ;;  %1250 = vmatprep.mubr.msk.f32.mxu1 %vm1426_vm0, %v1427_v1 }
 0x3b6   :  { %1248 = vmatprep.subr.mxu1 %v1427_v1  ;;  %v1631_v63 = vsel %vm779_vm5, %v778_v44, %v766_v62 }
 0x3b7   :  { %v806_v0 = vadd.f32 %v798_v58, %v1631_v63  ;;  %v1635_v2 = vadd.f32 %v800_v59, %v1631_v63  ;;  %v1638_v3 = vadd.f32 %v802_v60, %v1631_v63  ;;  %v1641_v4 = vadd.f32 %v804_v61, %v1631_v63 }
 0x3b9   :  { %1249 = vmatpush3.msra.mxu1 %v1537_v18  ;;  %814 = vst.msk [vmem:[#allocation5] sm:$0xff] %vm143_vm2, %v806_v0  ;;  %816 = vst.msk [vmem:[#allocation5 + $0x10] sm:$0xff] %vm143_vm2, %v1635_v2 }
 0x3ba   :  { %818 = vst.msk [vmem:[#allocation5 + $0x20] sm:$0xff] %vm143_vm2, %v1638_v3  ;;  %820 = vst.msk [vmem:[#allocation5 + $0x30] sm:$0xff] %vm143_vm2, %v1641_v4  ;;  %1321 = vmatprep.subr.bf16.mxu1 %v1320_v30 }
 0x487   :  { %v524_v5 = vpop.f32.mrb[4].mxu1 }
 0x488   :  { %1342 = vtanh.f32 %v524_v5  ;;  %v1234_v6 = vpop.f32.mrb[5].mxu1 }
 0x492   :  { %v1343_v7 = vpop.eup %1342 }
 0x493   :  { %v529_v8 = vadd.f32 %v1343_v7, %v1565_v21  ;;  %v803_v21 = vmul.f32 %v1607_v50, %v789_v37  ;;  %v822_v50 = vmul.f32 %v1603_v49, %v1603_v49 }
 0x495   :  { %1242 = vmatmul.mubr.msk.f32.vlgmr.msra.gmra.mrb[6].mxu0 %vm143_vm2, %v529_v8  ;;  %v1109_v53 = vadd.f32 -1.0, %v822_v50 }
 0x496   :  { %1319 = vmatpush3.bf16.msra.mxu0 %v1524_v13  ;;  %1259 = vmatprep.mubr.msk.f32.mxu0 %vm1426_vm0, %v1427_v1 }
 0x497   :  { %1257 = vmatprep.subr.mxu0 %v1427_v1  ;;  %v825_v55 = vsub.f32 %v1109_v53, %v824_v54 }
 0x499   :  { %v827_v56 = vsel %vm826_vm6, %v825_v55, 0.0 }
 0x49a   :  { %1258 = vmatpush3.msra.mxu0 %v1537_v18  ;;  %828 = vadd.xlane.f32.xlu0 %v827_v56 }
 0x568   :  { %v599_v9 = vpop.f32.mrb[6].mxu0 }
 0x569   :  { %1344 = vtanh.f32 %v599_v9  ;;  %v1243_v11 = vpop.f32.mrb[7].mxu0 }
 0x573   :  { %v1345_v14 = vpop.eup %1344 }
 0x574   :  { %v607_v15 = vadd.f32 %v1345_v14, %v605_v12 }
 0x576   :  { %1251 = vmatmul.mubr.msk.f32.vlgmr.msra.gmra.mrb[6].mxu1 %vm143_vm2, %v607_v15  ;;  %v768_v1 = vrot.slane %v607_v15, 6 }
 0x577   :  { %1268 = vmatprep.mubr.msk.f32.mxu1 %vm143_vm2, %v806_v0  ;;  %1323 = vmatpush3.bf16.msra.mxu1 %v1320_v30  ;;  %v831_v30 = vmul.f32 %v1631_v63, %v1631_v63 }
 0x578   :  { %v781_v23 = vsel %vm775_vm3, %v529_v8, %v768_v1  ;;  %1266 = vmatprep.subr.mxu1 %v849_v31 }
 0x57b   :  { %1267 = vmatpush3.msra.mxu1 %v849_v31  ;;  %v833_v31 = vsel %vm143_vm2, %v831_v30, 0.0 }
 0x649   :  { %v677_v16 = vpop.f32.mrb[6].mxu1 }
 0x64a   :  { %1346 = vtanh.f32 %v677_v16  ;;  %v1252_v13 = vpop.f32.mrb[7].mxu1 }
 0x654   :  { %v1347_v20 = vpop.eup %1346 }
 0x655   :  { %v684_v22 = vadd.f32 %v1347_v20, %v682_v17 }
 0x657   :  { %v770_v18 = vrot.slane %v684_v22, 4  ;;  %1260 = vmatmul.mubr.msk.f32.vlgmr.msra.gmra.mrb[8].mxu0 %vm143_vm2, %v684_v22 }
 0x659   :  { %v782_v25 = vsel %vm777_vm4, %v781_v23, %v770_v18 }
 0x72a   :  { %v754_v32 = vpop.f32.mrb[8].mxu0 }
 0x72b   :  { %1348 = vtanh.f32 %v754_v32  ;;  %v1261_v33 = vpop.f32.mrb[9].mxu0 }
 0x735   :  { %v1349_v39 = vpop.eup %1348 }
 0x736   :  { %v761_v40 = vadd.f32 %v1349_v39, %v759_v35 }
 0x738   :  { %v773_v44 = vrot.slane %v761_v40, 2 }
 0x73a   :  { %v783_v46 = vsel %vm779_vm5, %v782_v25, %v773_v44 }
 0x73b   :  { %v807_v47 = vadd.f32 %v799_v41, %v783_v46  ;;  %v809_v48 = vadd.f32 %v801_v42, %v783_v46  ;;  %v811_v51 = vadd.f32 %v803_v21, %v783_v46  ;;  %v813_v52 = vadd.f32 %v805_v43, %v783_v46 }
 0x73c   :  { %v832_v29 = vmul.f32 %v783_v46, %v783_v46 }
 0x73d   :  { %815 = vst.msk [vmem:[#allocation5 + $0x8] sm:$0xff] %vm143_vm2, %v807_v47  ;;  %1269 = vmatmul.mubr.msk.f32.vlgmr.msra.gmra.mrb[8].mxu1 %vm143_vm2, %v807_v47  ;;  %817 = vst.msk [vmem:[#allocation5 + $0x18] sm:$0xff] %vm143_vm2, %v809_v48 }
 0x73e   :  { %819 = vst.msk [vmem:[#allocation5 + $0x28] sm:$0xff] %vm143_vm2, %v811_v51  ;;  %821 = vst.msk [vmem:[#allocation5 + $0x38] sm:$0xff] %vm143_vm2, %v813_v52  ;;  %1271 = vmatprep.mubr.msk.f32.mxu1 %vm143_vm2, %v1635_v2 }
 0x741   :  { %1272 = vmatmul.mubr.msk.f32.gmra.mrb[10].mxu1 %vm143_vm2, %v809_v48 }
 0x742   :  { %1274 = vmatprep.mubr.msk.f32.mxu1 %vm143_vm2, %v1638_v3 }
 0x745   :  { %1275 = vmatmul.mubr.msk.f32.gmra.mrb[12].mxu1 %vm143_vm2, %v811_v51 }
 0x746   :  { %1277 = vmatprep.mubr.msk.f32.mxu1 %vm143_vm2, %v1641_v4 }
 0x749   :  { %1278 = vmatmul.mubr.msk.f32.gmra.mrb[14].mxu1 %vm143_vm2, %v813_v52 }
 0x810   :  { %v1270_v57 = vpop.f32.mrb[8].mxu1 }
 0x811   :  { %v980_v58 = vsub.f32 %v1544_v19, %v1270_v57  ;;  %v940_v59 = vpop.f32.mrb[9].mxu1 }
 0x812   :  { %v979_v60 = vsub.f32 %v1514_v10, %v940_v59 }
 0x813   :  { %v988_v61 = vmul.f32 %v980_v58, %v980_v58 }
 0x814   :  { %v1273_v62 = vpop.f32.mrb[10].mxu1  ;;  %v987_v0 = vmul.f32 %v979_v60, %v979_v60 }
 0x815   :  { %v982_v2 = vsub.f32 %v1544_v19, %v1273_v62  ;;  %v950_v3 = vpop.f32.mrb[11].mxu1  ;;  %v998_v49 = vsel %vm57_vm1, %v988_v61, 0.0 }
 0x816   :  { %v981_v45 = vsub.f32 %v1514_v10, %v950_v3  ;;  %999 = vadd.xlane.f32.xlu0 %v998_v49  ;;  %v995_v9 = vsel %vm57_vm1, %v987_v0, 0.0 }
 0x817   :  { %v990_v4 = vmul.f32 %v982_v2, %v982_v2 }
 0x818   :  { %v1276_v5 = vpop.f32.mrb[12].mxu1  ;;  %v989_v6 = vmul.f32 %v981_v45, %v981_v45 }
 0x819   :  { %v984_v7 = vsub.f32 %v1544_v19, %v1276_v5  ;;  %v960_v8 = vpop.f32.mrb[13].mxu1  ;;  %v1004_v11 = vsel %vm57_vm1, %v990_v4, 0.0 }
 0x81a   :  { %v983_v12 = vsub.f32 %v1514_v10, %v960_v8  ;;  %996 = vadd.xlane.f32.xlu0 %v995_v9  ;;  %1005 = vadd.xlane.f32.xlu1 %v1004_v11  ;;  %v1001_v20 = vsel %vm57_vm1, %v989_v6, 0.0 }
 0x81b   :  { %v992_v16 = vmul.f32 %v984_v7, %v984_v7 }
 0x81c   :  { %v991_v14 = vmul.f32 %v983_v12, %v983_v12  ;;  %v1279_v15 = vpop.f32.mrb[14].mxu1 }
 0x81d   :  { %v986_v13 = vsub.f32 %v1544_v19, %v1279_v15  ;;  %v970_v17 = vpop.f32.mrb[15].mxu1  ;;  %v1010_v25 = vsel %vm57_vm1, %v992_v16, 0.0 }
 0x81e   :  { %v985_v1 = vsub.f32 %v1514_v10, %v970_v17  ;;  %1002 = vadd.xlane.f32.xlu1 %v1001_v20  ;;  %v1007_v22 = vsel %vm57_vm1, %v991_v14, 0.0  ;;  %v836_v10 = vsel %vm143_vm2, %v832_v29, 0.0 }
 0x81f   :  { %v994_v18 = vmul.f32 %v986_v13, %v986_v13  ;;  %1008 = vadd.xlane.f32.xlu0 %v1007_v22 }
 0x820   :  { %v993_v23 = vmul.f32 %v985_v1, %v985_v1 }
 0x821   :  { %v1016_v28 = vsel %vm57_vm1, %v994_v18, 0.0 }
 0x822   :  { %1011 = vadd.xlane.f32.xlu1 %v1010_v25  ;;  %v1013_v19 = vsel %vm57_vm1, %v993_v23, 0.0 }
 0x823   :  { %1017 = vadd.xlane.f32.xlu0 %v1016_v28 }
 0x826   :  { %1014 = vadd.xlane.f32.xlu1 %v1013_v19 }
 0x827   :  { %837 = vadd.xlane.f32.xlu0 %v836_v10 }
 0x82a   :  { %834 = vadd.xlane.f32.xlu1 %v833_v31 }
 0x82b   :  { %1383 = shalt.err (!%p1380_p12)
}
 0x82c   :  { %s1384_s1 = scalar_lea.hbm %s1758_s7, 1024 }
 0x82d   :  { %p1385_p13 = scmp.ne.s32.totalorder %s1758_s7, %s1384_s1  ;;  %p1388_p0 = scmp.lt.u32.totalorder %s1384_s1, %s1758_s7 }
 0x82f   :  { %p1390_p1 = pnand %p1388_p0, %p1385_p13 }
 0x831   :  { %1393 = shalt.err (!%p1390_p1)
}
 0x832   :  { %1079 = dma.vmem_to_hbm [thread:$0]  %s1074_s18, 1024, %s1758_s7, [#allocation4], %s1423_s15, %s1423_s15, %s1424_s16   ;;  %v829_v63 = vpop.xlane.xlu0 %828  ;;  %v1039_v42 = vand.u32 127, %v218_v24  ;;  %vm1049_vm7 = vcmask 130112   ;;  %vm1064_vm8 = vcmask 1040384   ;;  %vm1066_vm9 = vcmask 123904  }
 0x833   :  { %v830_v51 = vmul.f32 0.5, %v829_v63  ;;  %s1429_s7 = smov [#allocation6]  }
 0x834   :  { %v1044_v50 = vadd.s32 4294967288, %v1039_v42  ;;  %v1042_v60 = vsub.s32 %v1039_v42, %v1568_v26  ;;  %s1086_s15 = sshll.u32 %s1429_s7, 4  ;;  %s1087_s15 = int_to_ptr.vmem [resolvable:$true] %s1086_s15 }
 0x835   :  { %v844_v59 = vrot.slane %v830_v51, %v1571_v27  ;;  %s1394_s16 = scalar_lea.vmem %s1087_s15, 32  ;;  %p1399_p3 = scmp.lt.s32.totalorder %s1087_s15, %s1087_s15 }
 0x836   :  { %v1047_v61 = vsub.s32 %v1044_v50, %v1568_v26  ;;  %p1395_p2 = scmp.ne.s32.totalorder %s1087_s15, %s1394_s16  ;;  %p1400_p4 = scmp.lt.s32.totalorder %s1394_s16, %s1394_s16 }
 0x838   :  { %p1401_p5 = por %p1400_p4, %p1399_p3 }
 0x83a   :  { %p1402_p6 = pnand %p1401_p5, %p1395_p2 }
 0x8a3   :  { %v1000_v32 = vpop.xlane.xlu0 %999 }
 0x8a4   :  { %v1020_v39 = vmul.f32 -0.5, %v1000_v32 }
 0x8a7   :  { %v997_v33 = vpop.xlane.xlu0 %996  ;;  %v1006_v34 = vpop.xlane.xlu1 %1005 }
 0x8a8   :  { %v1022_v36 = vmul.f32 -0.5, %v1006_v34  ;;  %v1019_v40 = vmul.f32 -0.5, %v997_v33 }
 0x8aa   :  { %v1030_v21 = vadd.f32 %v1022_v36, %v1020_v39 }
 0x8ab   :  { %v1003_v35 = vpop.xlane.xlu1 %1002 }
 0x8ac   :  { %v1021_v37 = vmul.f32 -0.5, %v1003_v35  ;;  %v1009_v38 = vpop.xlane.xlu0 %1008 }
 0x8ad   :  { %v1023_v44 = vmul.f32 -0.5, %v1009_v38 }
 0x8ae   :  { %v1027_v43 = vadd.f32 %v1021_v37, %v1019_v40 }
 0x8af   :  { %v1012_v41 = vpop.xlane.xlu1 %1011 }
 0x8b0   :  { %v1024_v46 = vmul.f32 -0.5, %v1012_v41  ;;  %v1018_v47 = vpop.xlane.xlu0 %1017  ;;  %v1028_v54 = vadd.f32 %v1027_v43, %v1023_v44 }
 0x8b1   :  { %v1026_v48 = vmul.f32 -0.5, %v1018_v47 }
 0x8b2   :  { %v1031_v52 = vadd.f32 %v1030_v21, %v1024_v46 }
 0x8b3   :  { %v1015_v53 = vpop.xlane.xlu1 %1014 }
 0x8b4   :  { %v1032_v55 = vadd.f32 %v1031_v52, %v1026_v48  ;;  %v1025_v56 = vmul.f32 -0.5, %v1015_v53  ;;  %v838_v57 = vpop.xlane.xlu0 %837 }
 0x8b5   :  { %v840_v58 = vmul.f32 0.5, %v838_v57 }
 0x8b6   :  { %v1029_v24 = vadd.f32 %v1028_v54, %v1025_v56  ;;  %v1035_v0 = vmul.f32 0.25, %v1032_v55 }
 0x8b7   :  { %v835_v62 = vpop.xlane.xlu1 %834  ;;  %v846_v3 = vadd.f32 %v844_v59, %v840_v58 }
 0x8b8   :  { %v1034_v2 = vmul.f32 0.25, %v1029_v24  ;;  %v839_v49 = vmul.f32 0.5, %v835_v62  ;;  %v1061_v5 = vrot.slane %v1035_v0, %v1047_v61 }
 0x8b9   :  { %v1048_v6 = vrot.slane %v846_v3, %v1047_v61 }
 0x8ba   :  { %v1057_v45 = vrot.slane %v1034_v2, %v1042_v60  ;;  %v845_v4 = vadd.f32 %v844_v59, %v839_v49 }
 0x8bc   :  { %v1043_v7 = vrot.slane %v845_v4, %v1042_v60  ;;  %v1062_v8 = vsel %vm1049_vm7, %v1061_v5, %v1057_v45 }
 0x8be   :  { %v1050_v27 = vsel %vm1049_vm7, %v1048_v6, %v1043_v7 }
 0x8bf   :  { %v1065_v9 = vsel %vm1064_vm8, %v1050_v27, %v1062_v8 }
 0x8c0   :  { %1067 = vst.msk [vmem:[#allocation6] sm:$0x3] %vm1066_vm9, %v1065_v9 }
 0x8c1   :  { %1405 = shalt.err (!%p1402_p6)
}
 0x8c2   :  { %s1406_s4 = scalar_lea.hbm %s1759_s8, 32 }
 0x8c3   :  { %p1407_p7 = scmp.ne.s32.totalorder %s1759_s8, %s1406_s4  ;;  %p1410_p8 = scmp.lt.u32.totalorder %s1406_s4, %s1759_s8 }
 0x8c5   :  { %p1412_p9 = pnand %p1410_p8, %p1407_p7 }
 0x8c7   :  { %1415 = shalt.err (!%p1412_p9)
}
 0x8c8   :  { %1089 = dma.vmem_to_hbm [thread:$0]  %s1087_s15, 32, %s1759_s8, [#allocation7]  }
 0x8c9   :  { %1418 = dma.done.wait [#allocation4], 1024  }
 0x8ca   :  { %1419 = vsyncadd [#allocation4], 4294966272 }
 0x8cb   :  { %1420 = dma.done.wait [#allocation7], 32  }
 0x8cc   :  { %1421 = vsyncadd [#allocation7], 4294967264 }
 0x8cd   :  { %1096 = vsyncpa [#allocation3], 1 }
 0x8ce   :  { %1097 = vsyncpa [#allocation4], 1 }
 0x8cf   :  { %1098 = vsyncpa [#allocation7], 1 }

</bundles_post_ra>
